<compile_context>
chip_gen: v7x
topology: tpu7x:2x2x1
jax: 0.10.0
libtpu: 0.0.40
codegen_flags: <defaults>
</compile_context>

<pallas_src>
import functools

import jax
import jax.numpy as jnp
from jax.experimental import pallas as pl
from jax.experimental.pallas import tpu as pltpu


def se_scale_kernel(x_ref, w1_ref, b1_ref, w2_ref, b2_ref, o_ref):
    # fc1 + relu  (MXU matmul, f32 accumulate; VPU broadcast-add + max).
    # jnp.dot promotes mixed bf16/f32 operands to f32 before the dot.
    h = jnp.dot(x_ref[...], w1_ref[...], preferred_element_type=jnp.float32)
    h = jnp.maximum(h + b1_ref[...], 0.0)
    # fc2 + sigmoid.  Note: if w2 is bf16 the fc1 activations are downcast to
    # bf16 for the MXU (intentional; slight deviation from the f32 reference).
    y = jnp.dot(h.astype(w2_ref.dtype), w2_ref[...],
                preferred_element_type=jnp.float32)
    y = y + b2_ref[...]
    o_ref[...] = jax.nn.sigmoid(y).astype(o_ref.dtype)


@functools.partial(
    jax.jit,
    static_argnames=("block_b", "x_buffers", "vmem_tile_budget_bytes"))
def se_scale(x, w1, b1, w2, b2, *, block_b=1024, x_buffers=2,
             vmem_tile_budget_bytes=24 * 1024 * 1024):
    """x: [B, C]; w1: [C, R]; b1: [R]; w2: [R, C]; b2: [C] -> [B, C] (x.dtype)."""
    B, C = x.shape
    R = w1.shape[1]
    out_dtype = x.dtype

    # Biases always live in f32 (cheap; keeps v5e's f32-only VPU/EUP happy).
    b1_2d = b1.reshape(1, R).astype(jnp.float32)
    b2_2d = b2.reshape(1, C).astype(jnp.float32)

    x_itemsize = x.dtype.itemsize
    o_itemsize = jnp.dtype(out_dtype).itemsize
    w_total_bytes = (w1.size * w1.dtype.itemsize + w2.size * w2.dtype.itemsize
                     + (R + C) * 4)

    # dtype-aware sublane packing: 8 rows (f32), 16 (bf16), 32 (int8/fp8).
    sub_mult = 8 * max(1, 4 // x_itemsize)
    n_x_bufs = max(2, x_buffers)

    # Largest batch tile whose pipelined x + out tiles fit the VMEM budget.
    row_bytes = C * (x_itemsize * n_x_bufs + o_itemsize * 2)
    max_rows = max(sub_mult,
                   (vmem_tile_budget_bytes // row_bytes) // sub_mult * sub_mult)

    tb = min(block_b, B, max_rows)
    if tb >= B:
        tb = B  # whole batch, single grid step (full-extent block is legal)
        if B >= 1024:
            # v7x dual-TC: big batches keep >=2 (even) grid steps so the
            # "parallel" axis actually gives both TensorCores work.
            half = -(-B // 2)
            tb = min(B, ((half + sub_mult - 1) // sub_mult) * sub_mult)
    else:
        tb = max(sub_mult, (tb // sub_mult) * sub_mult)
    grid = (pl.cdiv(B, tb),)

    # x / out: one (tb, C) tile per grid step (double-buffered by Pallas).
    x_spec_kwargs = {}
    if x_buffers > 2:
        # Only if a trace still shows exposed DMA after tile-size tuning;
        # otherwise the VMEM is better spent on a larger tile.
        x_spec_kwargs["pipeline_mode"] = pl.Buffered(x_buffers)
    x_spec = pl.BlockSpec((tb, C), lambda i: (i, 0), **x_spec_kwargs)
    o_spec = pl.BlockSpec((tb, C), lambda i: (i, 0))

    # Weights / biases: constant (0, 0) block every step -> DMA'd once, stay
    # resident in VMEM.  For production-size weights, single-buffer them (they
    # never change block index); the freed VMEM buys x/out tile rows, which
    # matters most under v7x's 64 MiB.
    w_spec_kwargs = {}
    n_w_bufs = 2
    if w_total_bytes > (512 << 10):
        w_spec_kwargs["pipeline_mode"] = pl.Buffered(1)
        n_w_bufs = 1
    w1_spec = pl.BlockSpec((C, R), lambda i: (0, 0), **w_spec_kwargs)
    b1_spec = pl.BlockSpec((1, R), lambda i: (0, 0), **w_spec_kwargs)
    w2_spec = pl.BlockSpec((R, C), lambda i: (0, 0), **w_spec_kwargs)
    b2_spec = pl.BlockSpec((1, C), lambda i: (0, 0), **w_spec_kwargs)

    # Explicit VMEM budget: actual working set + headroom, clamped so it is
    # safe on every generation (>= v5e's 16 MiB default, < v7x's 64 MiB phys).
    working_set = tb * C * (x_itemsize * n_x_bufs + o_itemsize * 2) \
        + n_w_bufs * w_total_bytes
    vmem_limit = int(min(48 << 20, max(16 << 20, working_set + (4 << 20))))

    # Advisory cost: two tiny matmuls + one sigmoid per element; HBM traffic
    # dominated by x in / y out.
    cost = pl.CostEstimate(
        flops=4 * B * C * R,
        transcendentals=B * C,
        bytes_accessed=B * C * (x_itemsize + o_itemsize) + w_total_bytes,
    )

    return pl.pallas_call(
        se_scale_kernel,
        out_shape=jax.ShapeDtypeStruct((B, C), out_dtype),
        grid=grid,
        in_specs=[x_spec, w1_spec, b1_spec, w2_spec, b2_spec],
        out_specs=o_spec,
        compiler_params=pltpu.CompilerParams(
            # Batch rows are independent -> shard the grid across TCs (v7x).
            dimension_semantics=("parallel",),
            vmem_limit_bytes=vmem_limit,
        ),
        cost_estimate=cost,
    )(x, w1, b1_2d, w2, b2_2d)


def se_scale_ref(x, w1, b1, w2, b2):
    h = jnp.maximum(x @ w1 + b1, 0.0)
    return jax.nn.sigmoid(h @ w2 + b2)


if __name__ == "__main__":
    # Forward-implied toy shapes: batch=64, in_channels=32, reduction=16.
    B, C, R = 64, 32, 16
    key = jax.random.PRNGKey(0)
    kx, kw1, kb1, kw2, kb2 = jax.random.split(key, 5)

    x = jax.random.normal(kx, (B, C), dtype=jnp.float32)

    # Parameters stored pre-transposed for row-major matmul
    # (PyTorch nn.Linear shapes are fc1: (R, C), fc2: (C, R)).
    w1 = jax.random.normal(kw1, (C, R), dtype=jnp.float32) * 0.1
    b1 = jax.random.normal(kb1, (R,), dtype=jnp.float32) * 0.1
    w2 = jax.random.normal(kw2, (R, C), dtype=jnp.float32) * 0.1
    b2 = jax.random.normal(kb2, (C,), dtype=jnp.float32) * 0.1

    ref = se_scale_ref(x, w1, b1, w2, b2)

    # 1) Toy config: whole batch in one block (grid of 1) -- at C=32/R=16 a
    #    tiled grid is pure per-step overhead.
    out = jax.block_until_ready(se_scale(x, w1, b1, w2, b2))
    assert out.shape == (B, C)
    assert jnp.allclose(out, ref, atol=1e-5, rtol=1e-5), "f32 mismatch"

    # 2) Non-divisible batch + multi-step grid: locks in partial-tile masking.
    Bp = 100
    xp = jax.random.normal(kx, (Bp, C), dtype=jnp.float32)
    outp = jax.block_until_ready(se_scale(xp, w1, b1, w2, b2, block_b=32))
    refp = se_scale_ref(xp, w1, b1, w2, b2)
    assert outp.shape == (Bp, C)
    assert jnp.allclose(outp, refp, atol=1e-5, rtol=1e-5), "partial-tile mismatch"

    # 3) bf16 x / out path (halves HBM traffic for this memory-bound kernel);
    #    f32 accumulation keeps it close to the f32 reference.
    out_bf = jax.block_until_ready(
        se_scale(x.astype(jnp.bfloat16), w1, b1, w2, b2))
    assert out_bf.dtype == jnp.bfloat16
    assert jnp.allclose(out_bf.astype(jnp.float32), ref, atol=1e-2, rtol=1e-2), \
        "bf16 mismatch"

    print("KERNEL_OK")
</pallas_src>

<mosaic_0001>
module attributes {stable_mosaic.version = 11 : i64} {
  func.func @se_scale_kernel(%arg0: i32, %arg1: memref<64x32xf32, #tpu.memory_space<vmem>>, %arg2: memref<32x16xf32, #tpu.memory_space<vmem>>, %arg3: memref<1x16xf32, #tpu.memory_space<vmem>>, %arg4: memref<16x32xf32, #tpu.memory_space<vmem>>, %arg5: memref<1x32xf32, #tpu.memory_space<vmem>>, %arg6: memref<64x32xf32, #tpu.memory_space<vmem>>) attributes {dimension_semantics = [#tpu.dimension_semantics<parallel>], iteration_bounds = array<i64: 1>, scalar_prefetch = 0 : i64, scratch_operands = 0 : i64, tpu.core_type = #tpu.core_type<tc>, window_params = [{transform_indices = @transform_0, window_bounds = array<i64: 64, 32>}, {pipeline_mode = #tpu.pipeline_mode<synchronous>, transform_indices = @transform_1, window_bounds = array<i64: 32, 16>}, {pipeline_mode = #tpu.pipeline_mode<synchronous>, transform_indices = @transform_2, window_bounds = array<i64: 1, 16>}, {pipeline_mode = #tpu.pipeline_mode<synchronous>, transform_indices = @transform_3, window_bounds = array<i64: 16, 32>}, {pipeline_mode = #tpu.pipeline_mode<synchronous>, transform_indices = @transform_4, window_bounds = array<i64: 1, 32>}, {transform_indices = @transform_5, window_bounds = array<i64: 64, 32>}]} {
    %c0 = arith.constant 0 : index
    %c0_0 = arith.constant 0 : index
    %0 = vector.load %arg1[%c0, %c0_0] : memref<64x32xf32, #tpu.memory_space<vmem>>, vector<64x32xf32>
    %c0_1 = arith.constant 0 : index
    %c0_2 = arith.constant 0 : index
    %1 = vector.load %arg2[%c0_1, %c0_2] : memref<32x16xf32, #tpu.memory_space<vmem>>, vector<32x16xf32>
    %cst = arith.constant dense<0.000000e+00> : vector<64x16xf32>
    %2 = tpu.matmul %0, %1, %cst {dimension_numbers = #tpu.dot_dimension_numbers<[1], [0], [0], [1], [0, 0, 1, 1], [], []>} : vector<64x32xf32>, vector<32x16xf32>, vector<64x16xf32> -> vector<64x16xf32>
    %c0_3 = arith.constant 0 : index
    %c0_4 = arith.constant 0 : index
    %3 = vector.load %arg3[%c0_3, %c0_4] : memref<1x16xf32, #tpu.memory_space<vmem>>, vector<1x16xf32>
    %4 = vector.broadcast %3 : vector<1x16xf32> to vector<64x16xf32>
    %5 = arith.addf %2, %4 : vector<64x16xf32>
    %cst_5 = arith.constant 0.000000e+00 : f32
    %6 = vector.broadcast %cst_5 : f32 to vector<64x16xf32>
    %7 = arith.maximumf %5, %6 : vector<64x16xf32>
    %c0_6 = arith.constant 0 : index
    %c0_7 = arith.constant 0 : index
    %8 = vector.load %arg4[%c0_6, %c0_7] : memref<16x32xf32, #tpu.memory_space<vmem>>, vector<16x32xf32>
    %cst_8 = arith.constant dense<0.000000e+00> : vector<64x32xf32>
    %9 = tpu.matmul %7, %8, %cst_8 {dimension_numbers = #tpu.dot_dimension_numbers<[1], [0], [0], [1], [0, 0, 1, 1], [], []>} : vector<64x16xf32>, vector<16x32xf32>, vector<64x32xf32> -> vector<64x32xf32>
    %c0_9 = arith.constant 0 : index
    %c0_10 = arith.constant 0 : index
    %10 = vector.load %arg5[%c0_9, %c0_10] : memref<1x32xf32, #tpu.memory_space<vmem>>, vector<1x32xf32>
    %11 = vector.broadcast %10 : vector<1x32xf32> to vector<64x32xf32>
    %12 = arith.addf %9, %11 : vector<64x32xf32>
    %13 = arith.negf %12 : vector<64x32xf32>
    %14 = math.exp %13 : vector<64x32xf32>
    %cst_11 = arith.constant 1.000000e+00 : f32
    %15 = vector.broadcast %cst_11 : f32 to vector<64x32xf32>
    %16 = arith.addf %15, %14 : vector<64x32xf32>
    %17 = arith.divf %15, %16 : vector<64x32xf32>
    %c0_12 = arith.constant 0 : index
    %c0_13 = arith.constant 0 : index
    %18 = vector.load %arg6[%c0_12, %c0_13] : memref<64x32xf32, #tpu.memory_space<vmem>>, vector<64x32xf32>
    tpu.vector_store %arg6[%c0_12, %c0_13], %17 {strides = array<i32>} : memref<64x32xf32, #tpu.memory_space<vmem>>, vector<64x32xf32>,
    return
  }
  func.func @transform_0(%arg0: i32) -> (i32, i32) {
    %c0_i32 = arith.constant 0 : i32
    %c0_i32_0 = arith.constant 0 : i32
    return %arg0, %c0_i32 : i32, i32
  }
  func.func @transform_1(%arg0: i32) -> (i32, i32) {
    %c0_i32 = arith.constant 0 : i32
    %c0_i32_0 = arith.constant 0 : i32
    %c0_i32_1 = arith.constant 0 : i32
    return %c0_i32, %c0_i32_0 : i32, i32
  }
  func.func @transform_2(%arg0: i32) -> (i32, i32) {
    %c0_i32 = arith.constant 0 : i32
    %c0_i32_0 = arith.constant 0 : i32
    %c0_i32_1 = arith.constant 0 : i32
    return %c0_i32, %c0_i32_0 : i32, i32
  }
  func.func @transform_3(%arg0: i32) -> (i32, i32) {
    %c0_i32 = arith.constant 0 : i32
    %c0_i32_0 = arith.constant 0 : i32
    %c0_i32_1 = arith.constant 0 : i32
    return %c0_i32, %c0_i32_0 : i32, i32
  }
  func.func @transform_4(%arg0: i32) -> (i32, i32) {
    %c0_i32 = arith.constant 0 : i32
    %c0_i32_0 = arith.constant 0 : i32
    %c0_i32_1 = arith.constant 0 : i32
    return %c0_i32, %c0_i32_0 : i32, i32
  }
  func.func @transform_5(%arg0: i32) -> (i32, i32) {
    %c0_i32 = arith.constant 0 : i32
    %c0_i32_0 = arith.constant 0 : i32
    return %arg0, %c0_i32 : i32, i32
  }
}

</mosaic_0001>

<bundles_post_ra>
// kernel: se_scale.1
= control target key start
LH: loop header
LB: loop body
LE: loop exit
PB: predicated region body
PF: predicated region fallthrough
CT: control target
= control target key end

     0   :  { %vm39_vm0 = vcmask 261120   ;;  %vm186_vm1 = vcmask 130048   ;;  %s630_s1 = inlined_call_operand.vmem [shape: f32[32,16], index: 1, kind: input, shape index: {}]   ;;  %s631_s0 = inlined_call_operand.vmem [shape: f32[64,32], index: 0, kind: input, shape index: {}]   ;;  %s632_s3 = inlined_call_operand.vmem [shape: f32[16,32], index: 3, kind: input, shape index: {}]   ;;  %s633_s2 = inlined_call_operand.vmem [shape: f32[1,16], index: 2, kind: input, shape index: {}]   ;;  %s634_s4 = inlined_call_operand.vmem [shape: f32[1,32], index: 4, kind: input, shape index: {}]   ;;  %s635_s5 = inlined_call_operand.vmem [shape: f32[64,32], index: 5, kind: output, shape index: {}]  }
   0x1   :  { %v28_v0 = vld [vmem:[%s630_s1] sm:$0xff]  ;;  %v29_v1 = vld [vmem:[%s630_s1 + $0x8] sm:$0xff]  ;;  %v30_v2 = vld [vmem:[%s630_s1 + $0x10] sm:$0xff] }
   0x2   :  { %v460_v3 = vpack.c.bf16 %v29_v1, %v28_v0  ;;  %v31_v4 = vld [vmem:[%s630_s1 + $0x18] sm:$0xff]  ;;  %v20_v5 = vld [vmem:[%s631_s0] sm:$0xff]  ;;  %v21_v7 = vld [vmem:[%s631_s0 + $0x8] sm:$0xff] }
   0x3   :  { %v464_v6 = vpack.c.bf16 %v31_v4, %v30_v2  ;;  %432 = vmatprep.mubr.msk.f32.mxu0 %vm39_vm0, %v20_v5  ;;  %v22_v8 = vld [vmem:[%s631_s0 + $0x10] sm:$0xff]  ;;  %v23_v9 = vld [vmem:[%s631_s0 + $0x18] sm:$0xff]  ;;  %v24_v10 = vld [vmem:[%s631_s0 + $0x20] sm:$0xff] }
   0x4   :  { %461 = vmatprep.subr.bf16.mxu0 %v460_v3  ;;  %v25_v11 = vld [vmem:[%s631_s0 + $0x28] sm:$0xff]  ;;  %v26_v12 = vld [vmem:[%s631_s0 + $0x30] sm:$0xff]  ;;  %v27_v13 = vld [vmem:[%s631_s0 + $0x38] sm:$0xff] }
   0x5   :  { %463 = vmatpush3.bf16.msra.mxu0 %v460_v3  ;;  %v177_v14 = vld [vmem:[%s632_s3] sm:$0xff]  ;;  %v178_v15 = vld [vmem:[%s632_s3 + $0x8] sm:$0xff] }
   0x6   :  { %465 = vmatprep.subr.bf16.mxu0 %v464_v6  ;;  %v468_v16 = vpack.c.bf16 %v178_v15, %v177_v14  ;;  %v376_v17 = vld [vmem:[%s633_s2] ss:$0 sm:$0xff] }
   0x7   :  { %v385_v42 = vld [vmem:[%s634_s4] ss:$0 sm:$0xff] }
   0x8   :  { %469 = vmatprep.subr.bf16.mxu1 %v468_v16 }
   0x9   :  { %467 = vmatpush3.bf16.msra.mxu0 %v464_v6  ;;  %471 = vmatpush3.bf16.msra.mxu1 %v468_v16 }
   0xc   :  { %433 = vmatmul.mubr.msk.f32.vlgmr.msra.gmra.mrb[0].mxu0 %vm39_vm0, %v21_v7 }
   0xd   :  { %435 = vmatprep.mubr.msk.f32.mxu0 %vm39_vm0, %v22_v8 }
  0x10   :  { %436 = vmatmul.mubr.msk.f32.gmra.mrb[2].mxu0 %vm39_vm0, %v23_v9 }
  0x11   :  { %438 = vmatprep.mubr.msk.f32.mxu0 %vm39_vm0, %v24_v10 }
  0x14   :  { %439 = vmatmul.mubr.msk.f32.gmra.mrb[4].mxu0 %vm39_vm0, %v25_v11 }
  0x15   :  { %441 = vmatprep.mubr.msk.f32.mxu0 %vm39_vm0, %v26_v12 }
  0x18   :  { %442 = vmatmul.mubr.msk.f32.gmra.mrb[6].mxu0 %vm39_vm0, %v27_v13 }
  0xdf   :  { %v434_v18 = vpop.f32.mrb[0].mxu0 }
  0xe0   :  { %v136_v19 = vadd.f32 %v434_v18, %v376_v17  ;;  %v130_v20 = vpop.f32.mrb[1].mxu0 }
  0xe1   :  { %v131_v21 = vadd.f32 %v376_v17, %v130_v20 }
  0xe2   :  { %v170_v24 = vmax.f32 %v136_v19, 0.0 }
  0xe3   :  { %v169_v22 = vmax.f32 %v131_v21, 0.0  ;;  %v437_v23 = vpop.f32.mrb[2].mxu0 }
  0xe4   :  { %v146_v25 = vadd.f32 %v437_v23, %v376_v17  ;;  %v140_v26 = vpop.f32.mrb[3].mxu0 }
  0xe5   :  { %v141_v27 = vadd.f32 %v376_v17, %v140_v26  ;;  %448 = vmatprep.mubr.msk.f32.mxu1 %vm186_vm1, %v169_v22 }
  0xe6   :  { %449 = vmatmul.mubr.msk.f32.vlgmr.msra.gmra.mrb[0].mxu1 %vm186_vm1, %v170_v24  ;;  %v172_v30 = vmax.f32 %v146_v25, 0.0 }
  0xe7   :  { %v171_v28 = vmax.f32 %v141_v27, 0.0  ;;  %v440_v29 = vpop.f32.mrb[4].mxu0 }
  0xe8   :  { %v156_v31 = vadd.f32 %v440_v29, %v376_v17  ;;  %v150_v32 = vpop.f32.mrb[5].mxu0 }
  0xe9   :  { %v151_v33 = vadd.f32 %v376_v17, %v150_v32  ;;  %451 = vmatprep.mubr.msk.f32.mxu1 %vm186_vm1, %v171_v28 }
  0xea   :  { %452 = vmatmul.mubr.msk.f32.gmra.mrb[2].mxu1 %vm186_vm1, %v172_v30  ;;  %v174_v36 = vmax.f32 %v156_v31, 0.0 }
  0xeb   :  { %v173_v34 = vmax.f32 %v151_v33, 0.0  ;;  %v443_v35 = vpop.f32.mrb[6].mxu0 }
  0xec   :  { %v166_v37 = vadd.f32 %v443_v35, %v376_v17  ;;  %v160_v38 = vpop.f32.mrb[7].mxu0 }
  0xed   :  { %v161_v39 = vadd.f32 %v376_v17, %v160_v38  ;;  %454 = vmatprep.mubr.msk.f32.mxu1 %vm186_vm1, %v173_v34 }
  0xee   :  { %455 = vmatmul.mubr.msk.f32.gmra.mrb[4].mxu1 %vm186_vm1, %v174_v36  ;;  %v176_v41 = vmax.f32 %v166_v37, 0.0 }
  0xef   :  { %v175_v40 = vmax.f32 %v161_v39, 0.0 }
  0xf1   :  { %457 = vmatprep.mubr.msk.f32.mxu1 %vm186_vm1, %v175_v40 }
  0xf2   :  { %458 = vmatmul.mubr.msk.f32.gmra.mrb[6].mxu1 %vm186_vm1, %v176_v41 }
 0x1b9   :  { %v450_v43 = vpop.f32.mrb[0].mxu1 }
 0x1ba   :  { %v283_v44 = vadd.f32 %v450_v43, %v385_v42  ;;  %v277_v45 = vpop.f32.mrb[1].mxu1 }
 0x1bb   :  { %v278_v46 = vadd.f32 %v385_v42, %v277_v45 }
 0x1bc   :  { %v395_v47 = vmul.f32 -1.442695, %v283_v44 }
 0x1bd   :  { %v394_v48 = vmul.f32 -1.442695, %v278_v46  ;;  %v453_v49 = vpop.f32.mrb[2].mxu1 }
 0x1be   :  { %472 = vpow2.f32 %v395_v47  ;;  %v293_v50 = vadd.f32 %v453_v49, %v385_v42  ;;  %v287_v51 = vpop.f32.mrb[3].mxu1 }
 0x1bf   :  { %474 = vpow2.f32 %v394_v48  ;;  %v288_v52 = vadd.f32 %v385_v42, %v287_v51 }
 0x1c0   :  { %v397_v53 = vmul.f32 -1.442695, %v293_v50 }
 0x1c1   :  { %v396_v54 = vmul.f32 -1.442695, %v288_v52  ;;  %v456_v55 = vpop.f32.mrb[4].mxu1 }
 0x1c2   :  { %476 = vpow2.f32 %v397_v53  ;;  %v303_v56 = vadd.f32 %v456_v55, %v385_v42  ;;  %v297_v57 = vpop.f32.mrb[5].mxu1 }
 0x1c3   :  { %478 = vpow2.f32 %v396_v54  ;;  %v298_v58 = vadd.f32 %v385_v42, %v297_v57 }
 0x1c4   :  { %v399_v59 = vmul.f32 -1.442695, %v303_v56 }
 0x1c5   :  { %v398_v60 = vmul.f32 -1.442695, %v298_v58  ;;  %v459_v61 = vpop.f32.mrb[6].mxu1 }
 0x1c6   :  { %480 = vpow2.f32 %v399_v59  ;;  %v313_v62 = vadd.f32 %v459_v61, %v385_v42  ;;  %v307_v63 = vpop.f32.mrb[7].mxu1 }
 0x1c7   :  { %482 = vpow2.f32 %v398_v60  ;;  %v308_v0 = vadd.f32 %v385_v42, %v307_v63 }
 0x1c8   :  { %v473_v1 = vpop.eup %472  ;;  %v401_v2 = vmul.f32 -1.442695, %v313_v62 }
 0x1c9   :  { %v475_v3 = vpop.eup %474  ;;  %v341_v4 = vadd.f32 1.0, %v473_v1  ;;  %v400_v5 = vmul.f32 -1.442695, %v308_v0 }
 0x1ca   :  { %v340_v6 = vadd.f32 1.0, %v475_v3  ;;  %484 = vpow2.f32 %v401_v2 }
 0x1cb   :  { %486 = vrcp.f32 %v341_v4 }
 0x1cc   :  { %v477_v7 = vpop.eup %476  ;;  %488 = vrcp.f32 %v340_v6 }
 0x1cd   :  { %v479_v8 = vpop.eup %478  ;;  %v343_v9 = vadd.f32 1.0, %v477_v7  ;;  %490 = vpow2.f32 %v400_v5 }
 0x1ce   :  { %v342_v10 = vadd.f32 1.0, %v479_v8 }
 0x1cf   :  { %492 = vrcp.f32 %v343_v9 }
 0x1d0   :  { %v481_v11 = vpop.eup %480  ;;  %494 = vrcp.f32 %v342_v10 }
 0x1d1   :  { %v483_v12 = vpop.eup %482  ;;  %v345_v13 = vadd.f32 1.0, %v481_v11 }
 0x1d2   :  { %v344_v14 = vadd.f32 1.0, %v483_v12 }
 0x1d3   :  { %496 = vrcp.f32 %v345_v13 }
 0x1d4   :  { %v485_v15 = vpop.eup %484  ;;  %498 = vrcp.f32 %v344_v14 }
 0x1d5   :  { %v487_v16 = vpop.eup %486  ;;  %v347_v17 = vadd.f32 1.0, %v485_v15 }
 0x1d6   :  { %v489_v18 = vpop.eup %488  ;;  %365 = vst.msk [vmem:[%s635_s5 + $0x8] sm:$0xff] %vm39_vm0, %v487_v16 }
 0x1d7   :  { %v491_v19 = vpop.eup %490  ;;  %364 = vst.msk [vmem:[%s635_s5] sm:$0xff] %vm39_vm0, %v489_v18  ;;  %500 = vrcp.f32 %v347_v17 }
 0x1d8   :  { %v346_v20 = vadd.f32 1.0, %v491_v19 }
 0x1d9   :  { %v493_v21 = vpop.eup %492 }
 0x1da   :  { %v495_v22 = vpop.eup %494  ;;  %367 = vst.msk [vmem:[%s635_s5 + $0x18] sm:$0xff] %vm39_vm0, %v493_v21  ;;  %502 = vrcp.f32 %v346_v20 }
 0x1db   :  { %366 = vst.msk [vmem:[%s635_s5 + $0x10] sm:$0xff] %vm39_vm0, %v495_v22 }
 0x1dd   :  { %v497_v23 = vpop.eup %496 }
 0x1de   :  { %v499_v24 = vpop.eup %498  ;;  %369 = vst.msk [vmem:[%s635_s5 + $0x28] sm:$0xff] %vm39_vm0, %v497_v23 }
 0x1df   :  { %368 = vst.msk [vmem:[%s635_s5 + $0x20] sm:$0xff] %vm39_vm0, %v499_v24 }
 0x1e1   :  { %v501_v25 = vpop.eup %500 }
 0x1e2   :  { %371 = vst.msk [vmem:[%s635_s5 + $0x38] sm:$0xff] %vm39_vm0, %v501_v25 }
 0x1e4   :  { %v503_v26 = vpop.eup %502 }
 0x1e5   :  { %370 = vst.msk [vmem:[%s635_s5 + $0x30] sm:$0xff] %vm39_vm0, %v503_v26 }

</bundles_post_ra>
